<compile_context>
chip_gen: v6e
topology: v6e:2x2x1
jax: 0.10.0
libtpu: 0.0.40
codegen_flags: <defaults>
</compile_context>

<pallas_src>
import jax
import jax.numpy as jnp
from jax import lax
from jax.experimental import pallas as pl
from jax.experimental.pallas import tpu as pltpu


def _round_up(x: int, m: int) -> int:
    return ((x + m - 1) // m) * m


def _make_quantile_loss_kernel(quantiles, n_valid: int, tile_n: int, needs_mask: bool):
    q_levels = tuple(float(q) for q in quantiles)

    def kernel(pred_ref, tgt_ref, out_ref):
        # pred_ref: (Q, tile_n)  native dtype; lanes = flattened (batch, pred_len)
        # tgt_ref:  (1, tile_n)  native dtype; broadcast over the quantile sublanes
        # out_ref:  (8, 128)     f32; per-block partial sum (splatted over the tile)
        pred = pred_ref[...].astype(jnp.float32)
        tgt = tgt_ref[...].astype(jnp.float32)
        err = tgt - pred                                          # (Q, tile_n)

        if needs_mask:
            # Last block overhangs N: zero the error there (garbage/NaN safe:
            # jnp.where selects, so masked junk never reaches the reduction).
            lane = lax.broadcasted_iota(jnp.int32, err.shape, 1)
            idx = pl.program_id(0) * tile_n + lane
            err = jnp.where(idx < n_valid, err, 0.0)

        # Per-row quantile level via sublane iota + scalar selects
        # (avoids capturing an f32[Q] constant array in the kernel).
        row = lax.broadcasted_iota(jnp.int32, err.shape, 0)
        q_map = jnp.full_like(err, q_levels[0])
        for i in range(1, len(q_levels)):
            q_map = jnp.where(row == i, jnp.float32(q_levels[i]), q_map)

        # pinball: max(q*e, (q-1)*e) == q*e + max(-e, 0)
        loss = q_map * err + jnp.maximum(-err, 0.0)
        partial = jnp.sum(loss)                                   # f32 per-block partial
        out_ref[...] = jnp.broadcast_to(partial, (8, 128))

    return kernel


def quantile_loss(predictions: jax.Array, targets: jax.Array, quantiles,
                  *, tile_n: int = 131072, quantile_major: bool = False) -> jax.Array:
    """Pallas equivalent of QuantileLoss.forward.

    predictions: (B, pred_len, num_quantiles)  (any float dtype)   [default layout]
                 or (num_quantiles, B*pred_len) if quantile_major=True
    targets:     (B, pred_len, 1)              (or anything reshapeable to (1, N))
    returns:     scalar float32
    """
    if quantile_major:
        # Fast path: predictions already quantile-major / lane-dense (no relayout pass).
        Q, N = predictions.shape
        pred_qm = predictions
        tgt_row = targets.reshape(1, N)
    else:
        B, T, Q = predictions.shape
        assert targets.shape == (B, T, 1)
        N = B * T
        # TODO(synk): emit this quantile-major (Q, B*T) layout upstream (from the
        # quantile head) so this transpose — one extra HBM pass — disappears.
        pred_qm = predictions.reshape(N, Q).T        # (Q, N), native dtype preserved
        tgt_row = targets.reshape(1, N)              # (1, N), free view

    # ---- Tile selection (128-lane aligned, no padding, mask the tail) ----
    needs_mask = False
    if N < 128:
        tile_n_eff = N          # full-dim block: allowed, single block, no mask
        n_blocks = 1
    else:
        tile_n_eff = max(128, min(_round_up(tile_n, 128), _round_up(N, 128)))
        n_blocks = pl.cdiv(N, tile_n_eff)
        # Rebalance so the tail block is as full as possible.
        tile_n_eff = _round_up(pl.cdiv(N, n_blocks), 128)
        n_blocks = pl.cdiv(N, tile_n_eff)
        # v7x: keep >= 2 grid blocks so both TensorCores stream HBM.
        if n_blocks == 1 and N >= 256:
            tile_n_eff = _round_up(pl.cdiv(N, 2), 128)
            n_blocks = pl.cdiv(N, tile_n_eff)
        needs_mask = (n_blocks * tile_n_eff != N)

    itemsize = jnp.dtype(predictions.dtype).itemsize
    cost = pl.CostEstimate(
        flops=6 * N * Q,
        transcendentals=0,
        bytes_accessed=(Q + 1) * N * itemsize + n_blocks * 8 * 128 * 4,
    )

    partials = pl.pallas_call(
        _make_quantile_loss_kernel(quantiles, N, tile_n_eff, needs_mask),
        out_shape=jax.ShapeDtypeStruct((8, n_blocks * 128), jnp.float32),
        grid=(n_blocks,),
        in_specs=[
            pl.BlockSpec((Q, tile_n_eff), lambda i: (0, i)),   # predictions (Q, tile)
            pl.BlockSpec((1, tile_n_eff), lambda i: (0, i)),   # targets     (1, tile)
        ],
        out_specs=pl.BlockSpec((8, 128), lambda i: (0, i)),
        compiler_params=pltpu.CompilerParams(
            dimension_semantics=("parallel",),            # dual-TC sharding on v7x
            vmem_limit_bytes=48 * 1024 * 1024,             # covers double-buffered blocks + temps
        ),
        cost_estimate=cost,
    )(pred_qm, tgt_row)

    # Each block splatted its partial over an (8,128) tile; pick one element per block.
    per_block = partials.reshape(8, n_blocks, 128)[0, :, 0]   # (n_blocks,) f32
    total = jnp.sum(per_block)
    # sum_i mean_i / Q  ==  total / (B*T*Q)
    return total / jnp.float32(N * Q)


def _reference(predictions, targets, quantiles):
    """Pure-JAX replica of the PyTorch forward (for verification)."""
    preds = predictions.astype(jnp.float32)
    tgt = jnp.broadcast_to(targets, predictions.shape).astype(jnp.float32)
    losses = []
    for i, q in enumerate(quantiles):
        error = tgt[:, :, i:i + 1] - preds[:, :, i:i + 1]
        loss = jnp.maximum(q * error, (q - 1.0) * error)
        losses.append(loss.mean())
    return sum(losses) / len(losses)


if __name__ == "__main__":
    quantiles = [0.1, 0.5, 0.9]
    Q = len(quantiles)

    # 1) Small shape matching the module's forward: single full-dim block (N < 128).
    B, T = 2, 8
    k_pred, k_tgt = jax.random.split(jax.random.PRNGKey(0))
    predictions = jax.random.normal(k_pred, (B, T, Q), dtype=jnp.float32)
    targets = jax.random.normal(k_tgt, (B, T, 1), dtype=jnp.float32)
    out = jax.block_until_ready(quantile_loss(predictions, targets, quantiles))
    ref = _reference(predictions, targets, quantiles)
    assert jnp.allclose(out, ref, rtol=1e-5, atol=1e-6), (out, ref)

    # 2) Multi-block + masked tail path with native bf16 inputs (N=388 -> 4 blocks of 128).
    B2, T2 = 4, 97
    k_pred2, k_tgt2 = jax.random.split(jax.random.PRNGKey(1))
    predictions2 = jax.random.normal(k_pred2, (B2, T2, Q), dtype=jnp.bfloat16)
    targets2 = jax.random.normal(k_tgt2, (B2, T2, 1), dtype=jnp.bfloat16)
    out2 = jax.block_until_ready(
        quantile_loss(predictions2, targets2, quantiles, tile_n=128))
    ref2 = _reference(predictions2, targets2, quantiles)
    assert jnp.allclose(out2, ref2, rtol=1e-2, atol=1e-3), (out2, ref2)

    # 3) Default tile size with forced 2-block split (dual-TC path), aligned N (no mask).
    B3, T3 = 8, 512
    k_pred3, k_tgt3 = jax.random.split(jax.random.PRNGKey(2))
    predictions3 = jax.random.normal(k_pred3, (B3, T3, Q), dtype=jnp.float32)
    targets3 = jax.random.normal(k_tgt3, (B3, T3, 1), dtype=jnp.float32)
    out3 = jax.block_until_ready(quantile_loss(predictions3, targets3, quantiles))
    ref3 = _reference(predictions3, targets3, quantiles)
    assert jnp.allclose(out3, ref3, rtol=1e-5, atol=1e-6), (out3, ref3)

    print("KERNEL_OK")
</pallas_src>

<mosaic_0001>
module attributes {stable_mosaic.version = 11 : i64} {
  func.func @kernel(%arg0: i32, %arg1: memref<3x16xf32, #tpu.memory_space<vmem>>, %arg2: memref<1x16xf32, #tpu.memory_space<vmem>>, %arg3: memref<8x128xf32, #tpu.memory_space<vmem>>) attributes {dimension_semantics = [#tpu.dimension_semantics<parallel>], iteration_bounds = array<i64: 1>, scalar_prefetch = 0 : i64, scratch_operands = 0 : i64, tpu.core_type = #tpu.core_type<tc>, window_params = [{transform_indices = @transform_0, window_bounds = array<i64: 3, 16>}, {transform_indices = @transform_1, window_bounds = array<i64: 1, 16>}, {transform_indices = @transform_2, window_bounds = array<i64: 8, 128>}]} {
    %c0 = arith.constant 0 : index
    %c0_0 = arith.constant 0 : index
    %0 = vector.load %arg1[%c0, %c0_0] : memref<3x16xf32, #tpu.memory_space<vmem>>, vector<3x16xf32>
    %c0_1 = arith.constant 0 : index
    %c0_2 = arith.constant 0 : index
    %1 = vector.load %arg2[%c0_1, %c0_2] : memref<1x16xf32, #tpu.memory_space<vmem>>, vector<1x16xf32>
    %2 = vector.broadcast %1 : vector<1x16xf32> to vector<3x16xf32>
    %3 = arith.subf %2, %0 : vector<3x16xf32>
    %4 = tpu.iota {dimensions = array<i32: 0>} : vector<3x16xi32>
    %cst = arith.constant 1.000000e-01 : f32
    %5 = vector.broadcast %cst : f32 to vector<3x16xf32>
    %c1_i32 = arith.constant 1 : i32
    %6 = vector.broadcast %c1_i32 : i32 to vector<3x16xi32>
    %7 = arith.cmpi eq, %4, %6 : vector<3x16xi32>
    %cst_3 = arith.constant 5.000000e-01 : f32
    %8 = vector.broadcast %cst_3 : f32 to vector<3x16xf32>
    %9 = arith.select %7, %8, %5 : vector<3x16xi1>, vector<3x16xf32>
    %c2_i32 = arith.constant 2 : i32
    %10 = vector.broadcast %c2_i32 : i32 to vector<3x16xi32>
    %11 = arith.cmpi eq, %4, %10 : vector<3x16xi32>
    %cst_4 = arith.constant 0.899999976 : f32
    %12 = vector.broadcast %cst_4 : f32 to vector<3x16xf32>
    %13 = arith.select %11, %12, %9 : vector<3x16xi1>, vector<3x16xf32>
    %14 = arith.mulf %13, %3 : vector<3x16xf32>
    %cst_5 = arith.constant 0.000000e+00 : f32
    %15 = vector.broadcast %cst_5 : f32 to vector<3x16xf32>
    %16 = arith.subf %15, %3 : vector<3x16xf32>
    %cst_6 = arith.constant 0.000000e+00 : f32
    %17 = vector.broadcast %cst_6 : f32 to vector<3x16xf32>
    %18 = arith.maximumf %16, %17 : vector<3x16xf32>
    %19 = arith.addf %14, %18 : vector<3x16xf32>
    %20 = vector.shape_cast %19 : vector<3x16xf32> to vector<1x3x16xf32>
    %cst_7 = arith.constant dense<0.000000e+00> : vector<1xf32>
    %21 = vector.multi_reduction <add>, %20, %cst_7 [1, 2] : vector<1x3x16xf32> to vector<1xf32>
    %22 = vector.shape_cast %21 : vector<1xf32> to vector<1x1x1xf32>
    %23 = vector.extract %22[0, 0, 0] : f32 from vector<1x1x1xf32>
    %24 = vector.broadcast %23 : f32 to vector<8x128xf32>
    %c0_8 = arith.constant 0 : index
    %c0_9 = arith.constant 0 : index
    %25 = vector.load %arg3[%c0_8, %c0_9] : memref<8x128xf32, #tpu.memory_space<vmem>>, vector<8x128xf32>
    tpu.vector_store %arg3[%c0_8, %c0_9], %24 {strides = array<i32>} : memref<8x128xf32, #tpu.memory_space<vmem>>, vector<8x128xf32>,
    return
  }
  func.func @transform_0(%arg0: i32) -> (i32, i32) {
    %c0_i32 = arith.constant 0 : i32
    %c0_i32_0 = arith.constant 0 : i32
    return %c0_i32, %arg0 : i32, i32
  }
  func.func @transform_1(%arg0: i32) -> (i32, i32) {
    %c0_i32 = arith.constant 0 : i32
    %c0_i32_0 = arith.constant 0 : i32
    return %c0_i32, %arg0 : i32, i32
  }
  func.func @transform_2(%arg0: i32) -> (i32, i32) {
    %c0_i32 = arith.constant 0 : i32
    %c0_i32_0 = arith.constant 0 : i32
    return %c0_i32, %arg0 : i32, i32
  }
}

</mosaic_0001>

<bundles_post_ra>
// kernel: tpu_custom_call.1
= control target key start
LH: loop header
LB: loop body
LE: loop exit
PB: predicated region body
PF: predicated region fallthrough
CT: control target
= control target key end

     0   :  { %7 = vsyncpa [#allocation3], 0  ;;  %s148_s0 = inlined_call_operand.hbm [shape: f32[3,16], index: 0, kind: input, shape index: {}]   ;;  %s149_s1 = inlined_call_operand.vmem [shape: f32[1,16], index: 1, kind: input, shape index: {}]   ;;  %s150_s2 = inlined_call_operand.hbm [shape: f32[8,128], index: 2, kind: output, shape index: {}]  }
   0x1   :  { %8 = vsyncpa [#allocation4], 0  ;;  %s121_s9 = smov [#allocation2]  }
   0x2   :  { %s15_s10 = sshll.u32 %s121_s9, 4  ;;  %s16_s10 = int_to_ptr.vmem [resolvable:$true] %s15_s10 }
   0x3   :  { %s85_s11 = scalar_lea.vmem %s16_s10, 64  ;;  %p90_p1 = scmp.lt.s32.totalorder %s16_s10, %s16_s10 }
   0x4   :  { %p86_p0 = scmp.ne.s32.totalorder %s16_s10, %s85_s11  ;;  %p91_p2 = scmp.lt.s32.totalorder %s85_s11, %s85_s11 }
   0x6   :  { %p92_p3 = por %p91_p2, %p90_p1 }
   0x8   :  { %p93_p4 = pnand %p92_p3, %p86_p0 }
   0xa   :  { %96 = shalt.err (!%p93_p4)
}
   0xb   :  { %18 = dma.hbm_to_vmem [thread:$0]  %s148_s0, 64, %s16_s10, [#allocation3]  }
   0xc   :  { %117 = dma.done.wait [#allocation3], 64  }
   0xd   :  { %118 = vsyncadd [#allocation3], 4294967232  ;;  %v33_v0 = vlaneseq  ;;  %v122_v2 = vmov 0.1   ;;  %v24_v4 = vld [vmem:[#allocation2] sm:$0x7] }
   0xe   :  { %v71_v5 = vld [vmem:[%s149_s1] ss:$0 sm:$0xff]  ;;  %vm43_vm2 = vcmask 124928   ;;  %s123_s0 = smov [#allocation5]  }
   0xf   :  { %v34_v1 = vshrl.u32 %v33_v0, 7  ;;  %v32_v7 = vsub.f32 %v71_v5, %v24_v4  ;;  %s62_s16 = sshll.u32 %s123_s0, 4  ;;  %s63_s16 = int_to_ptr.vmem [resolvable:$true] %s62_s16 }
  0x10   :  { %s97_s17 = scalar_lea.vmem %s63_s16, 128  ;;  %p102_p6 = scmp.lt.s32.totalorder %s63_s16, %s63_s16 }
  0x11   :  { %vm35_vm0 = vcmp.eq.s32.totalorder %v34_v1, 1  ;;  %vm37_vm1 = vcmp.eq.s32.totalorder %v34_v1, 2  ;;  %v40_v9 = vsub.f32 0.0, %v32_v7  ;;  %p98_p5 = scmp.ne.s32.totalorder %s63_s16, %s97_s17  ;;  %p103_p7 = scmp.lt.s32.totalorder %s97_s17, %s97_s17 }
  0x12   :  { %v36_v3 = vsel %vm35_vm0, 0.5, %v122_v2 }
  0x13   :  { %v38_v6 = vsel %vm37_vm1, 0.9, %v36_v3  ;;  %v41_v10 = vmax.f32 %v40_v9, 0.0  ;;  %p104_p8 = por %p103_p7, %p102_p6 }
  0x14   :  { %v39_v8 = vmul.f32 %v38_v6, %v32_v7 }
  0x15   :  { %p105_p9 = pnand %p104_p8, %p98_p5 }
  0x16   :  { %v42_v11 = vadd.f32 %v41_v10, %v39_v8 }
  0x18   :  { %v44_v12 = vsel %vm43_vm2, %v42_v11, 0.0 }
  0x19   :  { %45 = vadd.xlane.f32.xlu0 %v44_v12 }
  0xa2   :  { %v46_v13 = vpop.xlane.xlu0 %45 }
  0xa3   :  { %v47_v14 = vrot.slane %v46_v13, 4 }
  0xa5   :  { %v48_v15 = vadd.f32 %v47_v14, %v46_v13 }
  0xa7   :  { %v49_v16 = vrot.slane %v48_v15, 2 }
  0xa9   :  { %v50_v17 = vadd.f32 %v49_v16, %v48_v15 }
  0xab   :  { %v51_v18 = vrot.slane %v50_v17, 1 }
  0xad   :  { %v52_v19 = vadd.f32 %v51_v18, %v50_v17 }
  0xaf   :  { %72 = vpush %v52_v19 }
  0xe0   :  { %s73_s1 = spop %72 }
  0xe1   :  { %v54_v20 = vstv %s73_s1 }
  0xe2   :  { %55 = vst [vmem:[#allocation5] sm:$0xff] %v54_v20 }
  0xe3   :  { %108 = shalt.err (!%p105_p9)
}
  0xe4   :  { %65 = dma.vmem_to_hbm [thread:$0]  %s63_s16, 128, %s150_s2, [#allocation4]  }
  0xe5   :  { %119 = dma.done.wait [#allocation4], 128  }
  0xe6   :  { %120 = vsyncadd [#allocation4], 4294967168 }
  0xe7   :  { %69 = vsyncpa [#allocation3], 1 }
  0xe8   :  { %70 = vsyncpa [#allocation4], 1 }

</bundles_post_ra>
